<compile_context>
chip_gen: v6e
topology: v6e:2x2x1
jax: 0.10.0
libtpu: 0.0.40
codegen_flags: <defaults>
</compile_context>

<pallas_src>
import jax
import jax.numpy as jnp
from jax.experimental import pallas as pl
from jax.experimental.pallas import tpu as pltpu


def _pos_enc_add_kernel(pe_ref, x_ref, o_ref):
    # pe_ref block: (1, SD); x_ref/o_ref block: (tb, SD).
    # Accumulate in f32 on the VPU (free for a mem-bound kernel), cast on store.
    acc = x_ref[...].astype(jnp.float32) + pe_ref[...].astype(jnp.float32)
    o_ref[...] = acc.astype(o_ref.dtype)


def _sublanes_for(dtype) -> int:
    """Sublane packing multiple: 8 for 4-byte, 16 for 2-byte, 32 for 1-byte."""
    itemsize = jnp.dtype(dtype).itemsize
    return max(8, 32 // max(itemsize, 1))


def _num_tensorcores() -> int:
    """Best-effort TensorCores-per-chip query; conservative fallback of 1."""
    try:
        info = pltpu.get_tpu_info()
        for attr in ("num_cores", "tensorcores_per_chip", "num_tensorcores",
                     "cores_per_chip", "core_count"):
            v = getattr(info, attr, None)
            if isinstance(v, int) and v > 0:
                return v
    except Exception:
        pass
    return 1


def _choose_batch_tile(batch, row_bytes, target_bytes, sublanes, num_cores):
    """Pick tb: step count first (byte budget, balanced across cores), then
    tb = align_up(ceil(B/steps), sublanes). Full-extent when batch is small."""
    total = batch * row_bytes
    steps = max(1, -(-total // max(target_bytes, 1)))
    # Only force / balance a multi-step split when >1 TensorCore can use it and
    # the batch is large enough to split into sublane-aligned tiles.
    if num_cores > 1 and batch >= num_cores * sublanes:
        steps = max(steps, num_cores)
        steps = -(-steps // num_cores) * num_cores   # even, balanced split
    tb = -(-batch // steps)
    tb = -(-tb // sublanes) * sublanes               # align up -> unmasked vst
    return min(batch, tb)                            # full-extent always legal


def positional_encoding_forward(pos_encoding, x, *,
                                target_block_bytes=2 << 20,
                                min_pallas_bytes=1 << 20,
                                force_pallas=False,
                                donate_x=False,
                                x_buffer_count=2):
    """pos_encoding: (S, D); x: (B, S, D) -> (B, S, D) = pos_encoding + x."""
    B, S, D = x.shape
    assert pos_encoding.shape == (S, D)
    SD = S * D
    out_dtype = jnp.promote_types(x.dtype, pos_encoding.dtype)

    x_itemsize = jnp.dtype(x.dtype).itemsize
    out_itemsize = jnp.dtype(out_dtype).itemsize
    pe_itemsize = jnp.dtype(pos_encoding.dtype).itemsize

    # Tiny inputs: a standalone custom call is pure launch overhead — let XLA
    # fuse the broadcast-add into its neighbors instead.
    # TODO(synk): fuse this add upstream (patch-embed) in the real model path.
    if (B * SD * out_itemsize < min_pallas_bytes) and not force_pallas:
        return (pos_encoding[None, :, :] + x).astype(out_dtype)

    # Free, metadata-only reshapes: make the kernel's last axis lane-dense.
    x2 = x.reshape(B, SD)
    pe2 = pos_encoding.reshape(1, SD)

    sublanes = max(_sublanes_for(x.dtype), _sublanes_for(out_dtype))
    row_bytes = SD * max(x_itemsize, out_itemsize)
    num_cores = _num_tensorcores()
    tb = _choose_batch_tile(B, row_bytes, target_block_bytes, sublanes, num_cores)
    grid_steps = -(-B // tb)   # ceil-div; Pallas masks the tail block if B % tb

    # Scoped-VMEM budget with headroom (double-buffered x + out blocks + pe),
    # capped at 48 MiB (safe on v5e/v6e 128 MiB and v7x 64 MiB physical VMEM).
    x_blk = tb * SD * x_itemsize
    o_blk = tb * SD * out_itemsize
    vmem_needed = 2 * (x_blk + o_blk) + 2 * SD * pe_itemsize
    vmem_limit = int(min(48 << 20, max(32 << 20, 2 * vmem_needed)))

    cost = pl.CostEstimate(
        flops=B * SD,
        transcendentals=0,
        bytes_accessed=B * SD * (x_itemsize + out_itemsize) + SD * pe_itemsize,
    )

    # Optional pipeline-depth sweep knob; default 2 keeps the stock pipeline.
    if x_buffer_count != 2:
        x_spec = pl.BlockSpec((tb, SD), lambda i: (i, 0),
                              pipeline_mode=pl.Buffered(x_buffer_count))
        o_spec = pl.BlockSpec((tb, SD), lambda i: (i, 0),
                              pipeline_mode=pl.Buffered(x_buffer_count))
    else:
        x_spec = pl.BlockSpec((tb, SD), lambda i: (i, 0))
        o_spec = pl.BlockSpec((tb, SD), lambda i: (i, 0))

    # Aliasing is only valid when the output dtype/shape matches x exactly.
    aliases = {1: 0} if (donate_x and out_dtype == x.dtype) else {}

    out2 = pl.pallas_call(
        _pos_enc_add_kernel,
        out_shape=jax.ShapeDtypeStruct((B, SD), out_dtype),
        grid_spec=pl.GridSpec(
            grid=(grid_steps,),
            in_specs=[
                # positional encoding: same block every step => VMEM resident
                pl.BlockSpec((1, SD), lambda i: (0, 0)),
                x_spec,
            ],
            out_specs=o_spec,
        ),
        compiler_params=pltpu.CompilerParams(
            dimension_semantics=("parallel",),
            vmem_limit_bytes=vmem_limit,
        ),
        cost_estimate=cost,
        input_output_aliases=aliases,
    )(pe2, x2)

    return out2.reshape(B, S, D)


if __name__ == "__main__":
    # Module config: img_size=16, patch_size=4, dim=32
    img_size, patch_size, dim = 16, 4, 32
    seq_len = (img_size // patch_size) ** 2 + 1  # 17 tokens (16 patches + cls)

    key = jax.random.PRNGKey(0)
    k_pe, k_x1, k_x2, k_x3 = jax.random.split(key, 4)

    pos_encoding = jax.random.normal(k_pe, (seq_len, dim), dtype=jnp.float32)

    # --- Test 1: module's own tiny config -> XLA bypass path (no custom call) ---
    batch = 2
    x = jax.random.normal(k_x1, (batch, seq_len, dim), dtype=jnp.float32)
    ref = pos_encoding[None, :, :] + x
    out = jax.block_until_ready(positional_encoding_forward(pos_encoding, x))
    assert out.shape == (batch, seq_len, dim)
    assert jnp.allclose(out, ref, atol=1e-6, rtol=1e-6)

    # --- Test 2: same tiny config, forced Pallas path (single full-extent block) ---
    out_k = jax.block_until_ready(
        positional_encoding_forward(pos_encoding, x, force_pallas=True))
    assert jnp.allclose(out_k, ref, atol=1e-6, rtol=1e-6)

    # --- Test 3: multi-step tiling with a masked tail block + donated x (aliasing) ---
    batch3 = 20
    x3 = jax.random.normal(k_x2, (batch3, seq_len, dim), dtype=jnp.float32)
    row_bytes = seq_len * dim * 4
    out3 = jax.block_until_ready(positional_encoding_forward(
        pos_encoding, x3, force_pallas=True,
        target_block_bytes=8 * row_bytes,   # forces tb=8 -> 3 steps, tail of 4
        donate_x=True))
    ref3 = pos_encoding[None, :, :] + x3
    assert out3.shape == (batch3, seq_len, dim)
    assert jnp.allclose(out3, ref3, atol=1e-6, rtol=1e-6)

    # --- Test 4: bf16 activations -> 16-sublane tiles, f32-promoted add (PyTorch semantics) ---
    batch4 = 32
    x4 = jax.random.normal(k_x3, (batch4, seq_len, dim), dtype=jnp.bfloat16)
    out4 = jax.block_until_ready(
        positional_encoding_forward(pos_encoding, x4, force_pallas=True))
    ref4 = pos_encoding[None, :, :] + x4  # bf16 + f32 -> f32, same as torch
    assert out4.dtype == jnp.float32
    assert jnp.allclose(out4, ref4, atol=1e-6, rtol=1e-6)

    print("KERNEL_OK")
</pallas_src>

<mosaic_0001>
module attributes {stable_mosaic.version = 11 : i64} {
  func.func @_pos_enc_add_kernel(%arg0: i32, %arg1: memref<1x544xf32, #tpu.memory_space<vmem>>, %arg2: memref<2x544xf32, #tpu.memory_space<vmem>>, %arg3: memref<2x544xf32, #tpu.memory_space<vmem>>) attributes {dimension_semantics = [#tpu.dimension_semantics<parallel>], iteration_bounds = array<i64: 1>, scalar_prefetch = 0 : i64, scratch_operands = 0 : i64, tpu.core_type = #tpu.core_type<tc>, window_params = [{pipeline_mode = #tpu.pipeline_mode<synchronous>, transform_indices = @transform_0, window_bounds = array<i64: 1, 544>}, {transform_indices = @transform_1, window_bounds = array<i64: 2, 544>}, {transform_indices = @transform_2, window_bounds = array<i64: 2, 544>}]} {
    %c0 = arith.constant 0 : index
    %c0_0 = arith.constant 0 : index
    %0 = vector.load %arg2[%c0, %c0_0] : memref<2x544xf32, #tpu.memory_space<vmem>>, vector<2x544xf32>
    %c0_1 = arith.constant 0 : index
    %c0_2 = arith.constant 0 : index
    %1 = vector.load %arg1[%c0_1, %c0_2] : memref<1x544xf32, #tpu.memory_space<vmem>>, vector<1x544xf32>
    %2 = vector.broadcast %1 : vector<1x544xf32> to vector<2x544xf32>
    %3 = arith.addf %0, %2 : vector<2x544xf32>
    %c0_3 = arith.constant 0 : index
    %c0_4 = arith.constant 0 : index
    %4 = vector.load %arg3[%c0_3, %c0_4] : memref<2x544xf32, #tpu.memory_space<vmem>>, vector<2x544xf32>
    tpu.vector_store %arg3[%c0_3, %c0_4], %3 {strides = array<i32>} : memref<2x544xf32, #tpu.memory_space<vmem>>, vector<2x544xf32>,
    return
  }
  func.func @transform_0(%arg0: i32) -> (i32, i32) {
    %c0_i32 = arith.constant 0 : i32
    %c0_i32_0 = arith.constant 0 : i32
    %c0_i32_1 = arith.constant 0 : i32
    return %c0_i32, %c0_i32_0 : i32, i32
  }
  func.func @transform_1(%arg0: i32) -> (i32, i32) {
    %c0_i32 = arith.constant 0 : i32
    %c0_i32_0 = arith.constant 0 : i32
    return %arg0, %c0_i32 : i32, i32
  }
  func.func @transform_2(%arg0: i32) -> (i32, i32) {
    %c0_i32 = arith.constant 0 : i32
    %c0_i32_0 = arith.constant 0 : i32
    return %arg0, %c0_i32 : i32, i32
  }
}

</mosaic_0001>

<bundles_post_ra>
// kernel: tpu_custom_call.1
= control target key start
LH: loop header
LB: loop body
LE: loop exit
PB: predicated region body
PF: predicated region fallthrough
CT: control target
= control target key end

     0   :  { %7 = vsyncpa [#allocation3], 0  ;;  %s205_s0 = inlined_call_operand.hbm [shape: f32[1,544], index: 0, kind: input, shape index: {}]   ;;  %s206_s1 = inlined_call_operand.hbm [shape: f32[2,544], index: 1, kind: input, shape index: {}]   ;;  %s207_s2 = inlined_call_operand.hbm [shape: f32[2,544], index: 2, kind: output, shape index: {}]  }
   0x1   :  { %8 = vsyncpa [#allocation6], 0 }
   0x2   :  { %9 = vsyncpa [#allocation4], 0  ;;  %s177_s9 = smov [#allocation2]   ;;  %s178_s11 = smov [#allocation5]  }
   0x3   :  { %s16_s10 = sshll.u32 %s177_s9, 4  ;;  %s26_s12 = sshll.u32 %s178_s11, 4  ;;  %s17_s10 = int_to_ptr.vmem [resolvable:$true] %s16_s10  ;;  %s27_s12 = int_to_ptr.vmem [resolvable:$true] %s26_s12 }
   0x4   :  { %s119_s13 = scalar_lea.vmem %s17_s10, 80  ;;  %s123_s14 = scalar_lea.vmem %s17_s10, 96 }
   0x5   :  { %p120_p0 = scmp.ne.s32.totalorder %s17_s10, %s119_s13  ;;  %p124_p1 = scmp.lt.s32.totalorder %s17_s10, %s17_s10 }
   0x6   :  { %p125_p2 = scmp.lt.s32.totalorder %s123_s14, %s119_s13 }
   0x8   :  { %p126_p3 = por %p125_p2, %p124_p1 }
   0xa   :  { %p127_p4 = pnand %p126_p3, %p120_p0 }
   0xc   :  { %130 = shalt.err (!%p127_p4)
}
   0xd   :  { %19 = dma.hbm_to_vmem [thread:$0]  %s205_s0, 80, %s17_s10, [#allocation3]  }
   0xe   :  { %s139_s17 = scalar_lea.vmem %s27_s12, 160  ;;  %p144_p6 = scmp.lt.s32.totalorder %s27_s12, %s27_s12 }
   0xf   :  { %p140_p5 = scmp.ne.s32.totalorder %s27_s12, %s139_s17  ;;  %p145_p7 = scmp.lt.s32.totalorder %s139_s17, %s139_s17 }
  0x11   :  { %p146_p8 = por %p145_p7, %p144_p6 }
  0x13   :  { %p147_p9 = pnand %p146_p8, %p140_p5 }
  0x15   :  { %150 = shalt.err (!%p147_p9)
}
  0x16   :  { %29 = dma.hbm_to_vmem [thread:$0]  %s206_s1, 160, %s27_s12, [#allocation6]  }
  0x17   :  { %171 = dma.done.wait [#allocation3], 80  }
  0x18   :  { %172 = vsyncadd [#allocation3], 4294967216 }
  0x19   :  { %173 = dma.done.wait [#allocation6], 160  }
  0x1a   :  { %174 = vsyncadd [#allocation6], 4294967136  ;;  %v40_v0 = vlaneseq  ;;  %v179_v1 = vmov 1983009808   ;;  %v38_v10 = vld [vmem:[#allocation2] sm:$0x1f] }
  0x1b   :  { %v63_v2 = vunpack.c.l.s4 %v179_v1  ;;  %v37_v19 = vld [vmem:[#allocation5 + $0x8] sm:$0x3]  ;;  %vm89_vm0 = vcmask 254976   ;;  %v36_v23 = vld [vmem:[#allocation5] sm:$0xff]  ;;  %s180_s0 = smov [#allocation7]  }
  0x1c   :  { %v41_v3 = vshrl.u32 %v40_v0, 7  ;;  %s97_s1 = sshll.u32 %s180_s0, 4  ;;  %s98_s1 = int_to_ptr.vmem [resolvable:$true] %s97_s1 }
  0x1d   :  { %v64_v4 = vunpack.c.0.s8 %v63_v2  ;;  %s151_s20 = scalar_lea.vmem %s98_s1, 160  ;;  %p156_p11 = scmp.lt.s32.totalorder %s98_s1, %s98_s1 }
  0x1e   :  { %v42_v5 = vsub.s32 0, %v41_v3  ;;  %v46_v6 = vsub.s32 1, %v41_v3  ;;  %v50_v7 = vsub.s32 2, %v41_v3  ;;  %v54_v8 = vsub.s32 3, %v41_v3  ;;  %p152_p10 = scmp.ne.s32.totalorder %s98_s1, %s151_s20  ;;  %p157_p12 = scmp.lt.s32.totalorder %s151_s20, %s151_s20 }
  0x1f   :  { %v58_v9 = vsub.s32 4, %v41_v3  ;;  %v67_v11 = vsub.s32 %v64_v4, %v41_v3 }
  0x20   :  { %v43_v12 = vrot.slane %v38_v10, %v42_v5  ;;  %v47_v13 = vrot.slane %v38_v10, %v46_v6  ;;  %v51_v14 = vrot.slane %v38_v10, %v50_v7  ;;  %v55_v15 = vrot.slane %v38_v10, %v54_v8  ;;  %p158_p13 = por %p157_p12, %p156_p11 }
  0x21   :  { %v59_v16 = vrot.slane %v38_v10, %v58_v9 }
  0x22   :  { %v60_v17 = vcombine.low %v43_v12, %v47_v13  ;;  %v61_v18 = vcombine.low %v51_v14, %v55_v15  ;;  %p159_p0 = pnand %p158_p13, %p152_p10 }
  0x23   :  { %v83_v20 = vrot.slane %v59_v16, %v67_v11 }
  0x24   :  { %v68_v21 = vrot.slane %v60_v17, %v67_v11  ;;  %v75_v22 = vrot.slane %v61_v18, %v67_v11 }
  0x25   :  { %v87_v24 = vadd.f32 %v83_v20, %v37_v19 }
  0x26   :  { %v76_v25 = vcombine.low %v68_v21, %v75_v22 }
  0x27   :  { %90 = vst.msk [vmem:[#allocation7 + $0x8] sm:$0x3] %vm89_vm0, %v87_v24 }
  0x28   :  { %v86_v26 = vadd.f32 %v76_v25, %v36_v23 }
  0x2a   :  { %88 = vst [vmem:[#allocation7] sm:$0xff] %v86_v26 }
  0x2b   :  { %162 = shalt.err (!%p159_p0)
}
  0x2c   :  { %100 = dma.vmem_to_hbm [thread:$0]  %s98_s1, 160, %s207_s2, [#allocation4]  }
  0x2d   :  { %175 = dma.done.wait [#allocation4], 160  }
  0x2e   :  { %176 = vsyncadd [#allocation4], 4294967136 }
  0x2f   :  { %104 = vsyncpa [#allocation3], 1 }
  0x30   :  { %105 = vsyncpa [#allocation6], 1 }
  0x31   :  { %106 = vsyncpa [#allocation4], 1 }

</bundles_post_ra>
